<compile_context>
chip_gen: v7x
topology: tpu7x:2x2x1
jax: 0.10.0
libtpu: 0.0.40
codegen_flags: <defaults>
</compile_context>

<pallas_src>
import functools
import math

import jax
import jax.numpy as jnp
from jax import lax
from jax.experimental import pallas as pl
from jax.experimental.pallas import tpu as pltpu


def path_ranker_kernel(task_ref, cui_ref, path_ref,
                       in_wT_ref, in_b_ref,        # MHA in_proj : (E, 3E) pre-T, (1, 3E)
                       out_wT_ref, out_b_ref,      # MHA out_proj: (E, E)  pre-T, (1, E)
                       mid_wT_ref, mid_b_ref,      # mid_layer   : (E, h)  pre-T, (1, h)
                       score_w_ref, score_b_ref,   # score head  : (1, h), (1, 1)  (f32 VPU path)
                       attn_out_ref, aux_ref,
                       *, num_heads, aux_width):
    f32 = jnp.float32
    mm = in_wT_ref.dtype            # matmul operand dtype (bf16 by default)

    t = task_ref[0].astype(f32)     # (B, hdim)
    c = cui_ref[0].astype(f32)
    p = path_ref[0].astype(f32)
    B, hdim = t.shape
    E = 4 * hdim
    hd = E // num_heads
    scale = 1.0 / math.sqrt(hd)

    # merge_repr = cat(t, p, |t-p|, t*p) * cat(c, p, |c-p|, c*p).  It is never
    # materialized: the lane concats are folded into the QKV projection as four
    # K=hdim accumulating dots against the pre-transposed in_proj weight.
    segments = (t * c,
                p * p,
                jnp.abs(t - p) * jnp.abs(c - p),
                (t * p) * (c * p))
    in_wT = in_wT_ref[...]                                       # (E, 3E)
    qkv = jnp.zeros((B, 3 * E), f32)
    for i, seg in enumerate(segments):
        qkv = qkv + jnp.dot(seg.astype(mm), in_wT[i * hdim:(i + 1) * hdim, :],
                            preferred_element_type=f32)
    qkv = qkv + in_b_ref[...]
    q = qkv[:, 0:E] * scale
    k = qkv[:, E:2 * E]
    v = qkv[:, 2 * E:3 * E]

    # Per-head scaled dot-product attention (heads unrolled statically).  The output
    # projection is folded into the head loop, so no concat of head outputs is needed.
    out_wT = out_wT_ref[...]                                     # (E, E)
    attn_acc = jnp.zeros((B, E), f32)
    w_sum = jnp.zeros((B, B), f32)
    for h in range(num_heads):
        lo = h * hd
        qh = q[:, lo:lo + hd].astype(mm)
        kh = k[:, lo:lo + hd].astype(mm)
        vh = v[:, lo:lo + hd].astype(mm)
        # q @ k^T without a literal transpose (contract the last dim of both operands).
        s = lax.dot_general(qh, kh, (((1,), (1,)), ((), ())),
                            preferred_element_type=f32)          # (B, B)
        s = s - jnp.max(s, axis=-1, keepdims=True)
        e = jnp.exp(s)
        inv = pl.reciprocal(jnp.sum(e, axis=-1, keepdims=True), approx=True)
        pw = e * inv
        w_sum = w_sum + pw
        head = jnp.dot(pw.astype(mm), vh, preferred_element_type=f32)        # (B, hd)
        attn_acc = attn_acc + jnp.dot(head.astype(mm), out_wT[lo:lo + hd, :],
                                      preferred_element_type=f32)
    attn_out = attn_acc + out_b_ref[...]
    attn_out_ref[0] = attn_out

    # scores = score(relu(mid_layer(attn_out))).  The N=1 score matmul is a VPU
    # multiply + lane reduction instead of an MXU matmul.
    mid = jnp.dot(attn_out.astype(mm), mid_wT_ref[...], preferred_element_type=f32)
    mid = jnp.maximum(mid + mid_b_ref[...], 0.0)
    scores = jnp.sum(mid * score_w_ref[...], axis=-1, keepdims=True) + score_b_ref[...]

    # Lane-dense packed output slab: [scores | head-averaged attn weights | zero pad].
    attn_w = w_sum * (1.0 / num_heads)      # PyTorch default average_attn_weights=True
    parts = [scores, attn_w]
    pad = aux_width - 1 - B
    if pad > 0:
        parts.append(jnp.zeros((B, pad), f32))
    aux_ref[0] = jnp.concatenate(parts, axis=1)


def path_ranker_forward(task, cui, path, params, num_heads,
                        matmul_dtype=jnp.bfloat16):
    """PathRanker.forward.  Accepts (B, hdim) inputs (one group, like the PyTorch module)
    or (G, B, hdim) inputs (G independent groups in one launch; weights stay resident)."""
    squeeze = task.ndim == 2
    if squeeze:
        task, cui, path = task[None], cui[None], path[None]
    G, B, hdim = task.shape
    E = 4 * hdim
    assert E % num_heads == 0, "embed dim 4*hdim must be divisible by num_heads"
    aux_width = ((1 + B + 127) // 128) * 128     # lane-dense slab: scores + attn_w + pad

    f32 = jnp.float32
    # Pre-transpose weights here (no in-kernel .T); cast matmul weights to bf16 to halve
    # weight DMA.  Biases and the score-head weights stay f32 (VPU / bias-add path).
    in_wT = jnp.asarray(params["in_proj_w"], f32).T.astype(matmul_dtype)    # (E, 3E)
    out_wT = jnp.asarray(params["out_proj_w"], f32).T.astype(matmul_dtype)  # (E, E)
    mid_wT = jnp.asarray(params["mid_w"], f32).T.astype(matmul_dtype)       # (E, hdim)
    in_b = jnp.asarray(params["in_proj_b"], f32)                            # (1, 3E)
    out_b = jnp.asarray(params["out_proj_b"], f32)                          # (1, E)
    mid_b = jnp.asarray(params["mid_b"], f32)                               # (1, hdim)
    score_w = jnp.asarray(params["score_w"], f32)                           # (1, hdim)
    score_b = jnp.asarray(params["score_b"], f32)                           # (1, 1)

    inputs = [task, cui, path, in_wT, in_b, out_wT, out_b, mid_wT, mid_b, score_w, score_b]

    def group_spec(shape):
        # Activations / outputs: tiled over the group axis.
        return pl.BlockSpec((1,) + tuple(shape[1:]), lambda g: (g, 0, 0))

    def resident_spec(shape):
        # Weights: same block every grid step -> DMA'd once, stays VMEM-resident.
        return pl.BlockSpec(tuple(shape), lambda g: (0,) * len(shape))

    in_specs = [group_spec(task.shape), group_spec(cui.shape), group_spec(path.shape)]
    in_specs += [resident_spec(a.shape) for a in inputs[3:]]

    out_shape = (jax.ShapeDtypeStruct((G, B, E), f32),           # attn_output
                 jax.ShapeDtypeStruct((G, B, aux_width), f32))   # packed scores + attn_w
    out_specs = (group_spec((G, B, E)), group_spec((G, B, aux_width)))

    attn_out, aux = pl.pallas_call(
        functools.partial(path_ranker_kernel, num_heads=num_heads, aux_width=aux_width),
        grid=(G,),
        in_specs=in_specs,
        out_specs=out_specs,
        out_shape=out_shape,
        compiler_params=pltpu.CompilerParams(
            # The group axis is embarrassingly parallel -> use both TensorCores on v7x.
            dimension_semantics=("parallel",)),
    )(*inputs)

    scores = aux[:, :, 0:1]
    attn_w = aux[:, :, 1:1 + B]
    if squeeze:
        return scores[0], attn_out[0], attn_w[0]
    return scores, attn_out, attn_w


def _xavier_uniform(key, shape):
    fan_out, fan_in = shape
    bound = math.sqrt(6.0 / (fan_in + fan_out))
    return jax.random.uniform(key, shape, jnp.float32, -bound, bound)


def make_params(key, hdim, num_heads):
    E = 4 * hdim
    ks = jax.random.split(key, 6)
    return {
        # nn.MultiheadAttention: xavier_uniform in_proj_weight, zero in_proj_bias
        "in_proj_w": _xavier_uniform(ks[0], (3 * E, E)),
        "in_proj_b": jnp.zeros((1, 3 * E), jnp.float32),
        "out_proj_w": _xavier_uniform(ks[1], (E, E)),
        "out_proj_b": jnp.zeros((1, E), jnp.float32),
        # mid_layer / score: xavier_uniform weights (per module __init__)
        "mid_w": _xavier_uniform(ks[2], (hdim, E)),
        "mid_b": jax.random.uniform(ks[3], (1, hdim), jnp.float32, -0.01, 0.01),
        "score_w": _xavier_uniform(ks[4], (1, hdim)),
        "score_b": jax.random.uniform(ks[5], (1, 1), jnp.float32, -0.01, 0.01),
    }


def reference_forward(task, cui, path, params, num_heads, matmul_dtype=jnp.float32):
    """Pure-JAX replica of PathRanker.forward (cui_flag=True).  With matmul_dtype=bf16 it
    mirrors the kernel's operand precision (bf16 matmul operands, f32 accumulation)."""
    f32 = jnp.float32
    hdim = task.shape[1]
    E = 4 * hdim
    hd = E // num_heads

    def mm(a, b):
        return jnp.dot(a.astype(matmul_dtype), b.astype(matmul_dtype),
                       preferred_element_type=f32)

    task_rel = jnp.concatenate([task, path, jnp.abs(task - path), task * path], axis=1)
    cui_rel = jnp.concatenate([cui, path, jnp.abs(cui - path), cui * path], axis=1)
    x = task_rel * cui_rel
    qkv = mm(x, params["in_proj_w"].T) + params["in_proj_b"][0]
    q, k, v = qkv[:, :E], qkv[:, E:2 * E], qkv[:, 2 * E:]
    scale = 1.0 / math.sqrt(hd)
    outs, ws = [], []
    for h in range(num_heads):
        qh = q[:, h * hd:(h + 1) * hd] * scale
        kh = k[:, h * hd:(h + 1) * hd]
        vh = v[:, h * hd:(h + 1) * hd]
        w = jax.nn.softmax(mm(qh, kh.T), axis=-1)
        ws.append(w)
        outs.append(mm(w, vh))
    attn_w = sum(ws) / num_heads
    attn_out = mm(jnp.concatenate(outs, axis=-1), params["out_proj_w"].T) + params["out_proj_b"][0]
    mid = jax.nn.relu(mm(attn_out, params["mid_w"].T) + params["mid_b"][0])
    scores = mid @ params["score_w"].T + params["score_b"][0]
    return scores, attn_out, attn_w


if __name__ == "__main__":
    B = 8          # rows per candidate group (acts as the attention "sequence")
    hdim = 32      # -> embed dim 4*hdim = 128
    num_heads = 4  # head_dim = 32
    G = 4          # candidate groups for the batched launch

    key = jax.random.PRNGKey(0)
    k_task, k_cui, k_path, k_params, k_batch = jax.random.split(key, 5)
    task = jax.random.normal(k_task, (B, hdim), jnp.float32)
    cui = jax.random.normal(k_cui, (B, hdim), jnp.float32)
    path = jax.random.normal(k_path, (B, hdim), jnp.float32)
    params = make_params(k_params, hdim, num_heads)

    # --- single-group call (matches the PyTorch module's 2-D forward) ---
    scores, attn_out, attn_w = path_ranker_forward(task, cui, path, params, num_heads)
    jax.block_until_ready((scores, attn_out, attn_w))
    assert scores.shape == (B, 1)
    assert attn_out.shape == (B, 4 * hdim)
    assert attn_w.shape == (B, B)

    # Validate against a pure-JAX reference using the same matmul operand precision.
    r_scores, r_attn_out, r_attn_w = reference_forward(
        task, cui, path, params, num_heads, matmul_dtype=jnp.bfloat16)
    assert jnp.allclose(scores, r_scores, atol=1e-2, rtol=1e-2)
    assert jnp.allclose(attn_out, r_attn_out, atol=1e-2, rtol=1e-2)
    assert jnp.allclose(attn_w, r_attn_w, atol=1e-2, rtol=1e-2)

    # --- batched call: G candidate groups in one launch, weights loaded into VMEM once ---
    kt, kc, kp = jax.random.split(k_batch, 3)
    task_g = jax.random.normal(kt, (G, B, hdim), jnp.float32)
    cui_g = jax.random.normal(kc, (G, B, hdim), jnp.float32)
    path_g = jax.random.normal(kp, (G, B, hdim), jnp.float32)
    scores_g, attn_out_g, attn_w_g = path_ranker_forward(
        task_g, cui_g, path_g, params, num_heads)
    jax.block_until_ready((scores_g, attn_out_g, attn_w_g))
    assert scores_g.shape == (G, B, 1)
    assert attn_out_g.shape == (G, B, 4 * hdim)
    assert attn_w_g.shape == (G, B, B)
    g = 1
    rg_scores, rg_attn_out, rg_attn_w = reference_forward(
        task_g[g], cui_g[g], path_g[g], params, num_heads, matmul_dtype=jnp.bfloat16)
    assert jnp.allclose(scores_g[g], rg_scores, atol=1e-2, rtol=1e-2)
    assert jnp.allclose(attn_out_g[g], rg_attn_out, atol=1e-2, rtol=1e-2)
    assert jnp.allclose(attn_w_g[g], rg_attn_w, atol=1e-2, rtol=1e-2)

    print("KERNEL_OK")
</pallas_src>

<mosaic_0001>
module attributes {stable_mosaic.version = 11 : i64} {
  func.func @path_ranker_kernel(%arg0: i32, %arg1: memref<1x8x32xf32, #tpu.memory_space<vmem>>, %arg2: memref<1x8x32xf32, #tpu.memory_space<vmem>>, %arg3: memref<1x8x32xf32, #tpu.memory_space<vmem>>, %arg4: memref<128x384xbf16, #tpu.memory_space<vmem>>, %arg5: memref<1x384xf32, #tpu.memory_space<vmem>>, %arg6: memref<128x128xbf16, #tpu.memory_space<vmem>>, %arg7: memref<1x128xf32, #tpu.memory_space<vmem>>, %arg8: memref<128x32xbf16, #tpu.memory_space<vmem>>, %arg9: memref<1x32xf32, #tpu.memory_space<vmem>>, %arg10: memref<1x32xf32, #tpu.memory_space<vmem>>, %arg11: memref<1x1xf32, #tpu.memory_space<vmem>>, %arg12: memref<1x8x128xf32, #tpu.memory_space<vmem>>, %arg13: memref<1x8x128xf32, #tpu.memory_space<vmem>>) attributes {dimension_semantics = [#tpu.dimension_semantics<parallel>], iteration_bounds = array<i64: 1>, scalar_prefetch = 0 : i64, scratch_operands = 0 : i64, tpu.core_type = #tpu.core_type<tc>, window_params = [{transform_indices = @transform_0, window_bounds = array<i64: 1, 8, 32>}, {transform_indices = @transform_1, window_bounds = array<i64: 1, 8, 32>}, {transform_indices = @transform_2, window_bounds = array<i64: 1, 8, 32>}, {pipeline_mode = #tpu.pipeline_mode<synchronous>, transform_indices = @transform_3, window_bounds = array<i64: 128, 384>}, {pipeline_mode = #tpu.pipeline_mode<synchronous>, transform_indices = @transform_4, window_bounds = array<i64: 1, 384>}, {pipeline_mode = #tpu.pipeline_mode<synchronous>, transform_indices = @transform_5, window_bounds = array<i64: 128, 128>}, {pipeline_mode = #tpu.pipeline_mode<synchronous>, transform_indices = @transform_6, window_bounds = array<i64: 1, 128>}, {pipeline_mode = #tpu.pipeline_mode<synchronous>, transform_indices = @transform_7, window_bounds = array<i64: 128, 32>}, {pipeline_mode = #tpu.pipeline_mode<synchronous>, transform_indices = @transform_8, window_bounds = array<i64: 1, 32>}, {pipeline_mode = #tpu.pipeline_mode<synchronous>, transform_indices = @transform_9, window_bounds = array<i64: 1, 32>}, {pipeline_mode = #tpu.pipeline_mode<synchronous>, transform_indices = @transform_10, window_bounds = array<i64: 1, 1>}, {transform_indices = @transform_11, window_bounds = array<i64: 1, 8, 128>}, {transform_indices = @transform_12, window_bounds = array<i64: 1, 8, 128>}]} {
    %c0 = arith.constant 0 : index
    %c0_0 = arith.constant 0 : index
    %c0_1 = arith.constant 0 : index
    %0 = vector.load %arg1[%c0, %c0_0, %c0_1] : memref<1x8x32xf32, #tpu.memory_space<vmem>>, vector<1x8x32xf32>
    %1 = vector.shape_cast %0 : vector<1x8x32xf32> to vector<8x32xf32>
    %c0_2 = arith.constant 0 : index
    %c0_3 = arith.constant 0 : index
    %c0_4 = arith.constant 0 : index
    %2 = vector.load %arg2[%c0_2, %c0_3, %c0_4] : memref<1x8x32xf32, #tpu.memory_space<vmem>>, vector<1x8x32xf32>
    %3 = vector.shape_cast %2 : vector<1x8x32xf32> to vector<8x32xf32>
    %c0_5 = arith.constant 0 : index
    %c0_6 = arith.constant 0 : index
    %c0_7 = arith.constant 0 : index
    %4 = vector.load %arg3[%c0_5, %c0_6, %c0_7] : memref<1x8x32xf32, #tpu.memory_space<vmem>>, vector<1x8x32xf32>
    %5 = vector.shape_cast %4 : vector<1x8x32xf32> to vector<8x32xf32>
    %6 = arith.mulf %1, %3 : vector<8x32xf32>
    %7 = arith.mulf %5, %5 : vector<8x32xf32>
    %8 = arith.subf %1, %5 : vector<8x32xf32>
    %9 = math.absf %8 : vector<8x32xf32>
    %10 = arith.subf %3, %5 : vector<8x32xf32>
    %11 = math.absf %10 : vector<8x32xf32>
    %12 = arith.mulf %9, %11 : vector<8x32xf32>
    %13 = arith.mulf %1, %5 : vector<8x32xf32>
    %14 = arith.mulf %3, %5 : vector<8x32xf32>
    %15 = arith.mulf %13, %14 : vector<8x32xf32>
    %c0_8 = arith.constant 0 : index
    %c0_9 = arith.constant 0 : index
    %16 = vector.load %arg4[%c0_8, %c0_9] : memref<128x384xbf16, #tpu.memory_space<vmem>>, vector<128x384xbf16>
    %cst = arith.constant 0.000000e+00 : f32
    %17 = vector.broadcast %cst : f32 to vector<8x384xf32>
    %18 = arith.truncf %6 : vector<8x32xf32> to vector<8x32xbf16>
    %19 = vector.extract_strided_slice %16 {offsets = [0, 0], sizes = [32, 384], strides = [1, 1]} : vector<128x384xbf16> to vector<32x384xbf16>
    %cst_10 = arith.constant dense<0.000000e+00> : vector<8x384xf32>
    %20 = tpu.matmul %18, %19, %cst_10 {dimension_numbers = #tpu.dot_dimension_numbers<[1], [0], [0], [1], [0, 0, 1, 1], [], []>} : vector<8x32xbf16>, vector<32x384xbf16>, vector<8x384xf32> -> vector<8x384xf32>
    %21 = arith.addf %17, %20 : vector<8x384xf32>
    %22 = arith.truncf %7 : vector<8x32xf32> to vector<8x32xbf16>
    %23 = vector.extract_strided_slice %16 {offsets = [32, 0], sizes = [32, 384], strides = [1, 1]} : vector<128x384xbf16> to vector<32x384xbf16>
    %cst_11 = arith.constant dense<0.000000e+00> : vector<8x384xf32>
    %24 = tpu.matmul %22, %23, %cst_11 {dimension_numbers = #tpu.dot_dimension_numbers<[1], [0], [0], [1], [0, 0, 1, 1], [], []>} : vector<8x32xbf16>, vector<32x384xbf16>, vector<8x384xf32> -> vector<8x384xf32>
    %25 = arith.addf %21, %24 : vector<8x384xf32>
    %26 = arith.truncf %12 : vector<8x32xf32> to vector<8x32xbf16>
    %27 = vector.extract_strided_slice %16 {offsets = [64, 0], sizes = [32, 384], strides = [1, 1]} : vector<128x384xbf16> to vector<32x384xbf16>
    %cst_12 = arith.constant dense<0.000000e+00> : vector<8x384xf32>
    %28 = tpu.matmul %26, %27, %cst_12 {dimension_numbers = #tpu.dot_dimension_numbers<[1], [0], [0], [1], [0, 0, 1, 1], [], []>} : vector<8x32xbf16>, vector<32x384xbf16>, vector<8x384xf32> -> vector<8x384xf32>
    %29 = arith.addf %25, %28 : vector<8x384xf32>
    %30 = arith.truncf %15 : vector<8x32xf32> to vector<8x32xbf16>
    %31 = vector.extract_strided_slice %16 {offsets = [96, 0], sizes = [32, 384], strides = [1, 1]} : vector<128x384xbf16> to vector<32x384xbf16>
    %cst_13 = arith.constant dense<0.000000e+00> : vector<8x384xf32>
    %32 = tpu.matmul %30, %31, %cst_13 {dimension_numbers = #tpu.dot_dimension_numbers<[1], [0], [0], [1], [0, 0, 1, 1], [], []>} : vector<8x32xbf16>, vector<32x384xbf16>, vector<8x384xf32> -> vector<8x384xf32>
    %33 = arith.addf %29, %32 : vector<8x384xf32>
    %c0_14 = arith.constant 0 : index
    %c0_15 = arith.constant 0 : index
    %34 = vector.load %arg5[%c0_14, %c0_15] : memref<1x384xf32, #tpu.memory_space<vmem>>, vector<1x384xf32>
    %35 = vector.broadcast %34 : vector<1x384xf32> to vector<8x384xf32>
    %36 = arith.addf %33, %35 : vector<8x384xf32>
    %37 = vector.extract_strided_slice %36 {offsets = [0, 0], sizes = [8, 128], strides = [1, 1]} : vector<8x384xf32> to vector<8x128xf32>
    %cst_16 = arith.constant 0.176776692 : f32
    %38 = vector.broadcast %cst_16 : f32 to vector<8x128xf32>
    %39 = arith.mulf %37, %38 : vector<8x128xf32>
    %40 = vector.extract_strided_slice %36 {offsets = [0, 128], sizes = [8, 128], strides = [1, 1]} : vector<8x384xf32> to vector<8x128xf32>
    %41 = vector.extract_strided_slice %36 {offsets = [0, 256], sizes = [8, 128], strides = [1, 1]} : vector<8x384xf32> to vector<8x128xf32>
    %c0_17 = arith.constant 0 : index
    %c0_18 = arith.constant 0 : index
    %42 = vector.load %arg6[%c0_17, %c0_18] : memref<128x128xbf16, #tpu.memory_space<vmem>>, vector<128x128xbf16>
    %cst_19 = arith.constant 0.000000e+00 : f32
    %43 = vector.broadcast %cst_19 : f32 to vector<8x128xf32>
    %cst_20 = arith.constant 0.000000e+00 : f32
    %44 = vector.broadcast %cst_20 : f32 to vector<8x8xf32>
    %45 = vector.extract_strided_slice %39 {offsets = [0, 0], sizes = [8, 32], strides = [1, 1]} : vector<8x128xf32> to vector<8x32xf32>
    %46 = arith.truncf %45 : vector<8x32xf32> to vector<8x32xbf16>
    %47 = vector.extract_strided_slice %40 {offsets = [0, 0], sizes = [8, 32], strides = [1, 1]} : vector<8x128xf32> to vector<8x32xf32>
    %48 = arith.truncf %47 : vector<8x32xf32> to vector<8x32xbf16>
    %49 = vector.extract_strided_slice %41 {offsets = [0, 0], sizes = [8, 32], strides = [1, 1]} : vector<8x128xf32> to vector<8x32xf32>
    %50 = arith.truncf %49 : vector<8x32xf32> to vector<8x32xbf16>
    %cst_21 = arith.constant dense<0.000000e+00> : vector<8x8xf32>
    %51 = tpu.matmul %46, %48, %cst_21 {dimension_numbers = #tpu.dot_dimension_numbers<[1], [1], [0], [0], [0, 0, 1, 0], [], []>} : vector<8x32xbf16>, vector<8x32xbf16>, vector<8x8xf32> -> vector<8x8xf32>
    %cst_22 = arith.constant dense<0xFF800000> : vector<8xf32>
    %52 = vector.multi_reduction <maximumf>, %51, %cst_22 [1] : vector<8x8xf32> to vector<8xf32>
    %53 = vector.shape_cast %52 : vector<8xf32> to vector<8x1xf32>
    %54 = vector.broadcast %53 : vector<8x1xf32> to vector<8x8xf32>
    %55 = arith.subf %51, %54 : vector<8x8xf32>
    %56 = math.exp %55 : vector<8x8xf32>
    %cst_23 = arith.constant dense<0.000000e+00> : vector<8xf32>
    %57 = vector.multi_reduction <add>, %56, %cst_23 [1] : vector<8x8xf32> to vector<8xf32>
    %58 = vector.shape_cast %57 : vector<8xf32> to vector<8x1xf32>
    %59 = tpu.reciprocal %58 {approx = true} : vector<8x1xf32> -> vector<8x1xf32>
    %60 = vector.broadcast %59 : vector<8x1xf32> to vector<8x8xf32>
    %61 = arith.mulf %56, %60 : vector<8x8xf32>
    %62 = arith.addf %44, %61 : vector<8x8xf32>
    %63 = arith.truncf %61 : vector<8x8xf32> to vector<8x8xbf16>
    %cst_24 = arith.constant dense<0.000000e+00> : vector<8x32xf32>
    %64 = tpu.matmul %63, %50, %cst_24 {dimension_numbers = #tpu.dot_dimension_numbers<[1], [0], [0], [1], [0, 0, 1, 1], [], []>} : vector<8x8xbf16>, vector<8x32xbf16>, vector<8x32xf32> -> vector<8x32xf32>
    %65 = arith.truncf %64 : vector<8x32xf32> to vector<8x32xbf16>
    %66 = vector.extract_strided_slice %42 {offsets = [0, 0], sizes = [32, 128], strides = [1, 1]} : vector<128x128xbf16> to vector<32x128xbf16>
    %cst_25 = arith.constant dense<0.000000e+00> : vector<8x128xf32>
    %67 = tpu.matmul %65, %66, %cst_25 {dimension_numbers = #tpu.dot_dimension_numbers<[1], [0], [0], [1], [0, 0, 1, 1], [], []>} : vector<8x32xbf16>, vector<32x128xbf16>, vector<8x128xf32> -> vector<8x128xf32>
    %68 = arith.addf %43, %67 : vector<8x128xf32>
    %69 = vector.extract_strided_slice %39 {offsets = [0, 32], sizes = [8, 32], strides = [1, 1]} : vector<8x128xf32> to vector<8x32xf32>
    %70 = arith.truncf %69 : vector<8x32xf32> to vector<8x32xbf16>
    %71 = vector.extract_strided_slice %40 {offsets = [0, 32], sizes = [8, 32], strides = [1, 1]} : vector<8x128xf32> to vector<8x32xf32>
    %72 = arith.truncf %71 : vector<8x32xf32> to vector<8x32xbf16>
    %73 = vector.extract_strided_slice %41 {offsets = [0, 32], sizes = [8, 32], strides = [1, 1]} : vector<8x128xf32> to vector<8x32xf32>
    %74 = arith.truncf %73 : vector<8x32xf32> to vector<8x32xbf16>
    %cst_26 = arith.constant dense<0.000000e+00> : vector<8x8xf32>
    %75 = tpu.matmul %70, %72, %cst_26 {dimension_numbers = #tpu.dot_dimension_numbers<[1], [1], [0], [0], [0, 0, 1, 0], [], []>} : vector<8x32xbf16>, vector<8x32xbf16>, vector<8x8xf32> -> vector<8x8xf32>
    %cst_27 = arith.constant dense<0xFF800000> : vector<8xf32>
    %76 = vector.multi_reduction <maximumf>, %75, %cst_27 [1] : vector<8x8xf32> to vector<8xf32>
    %77 = vector.shape_cast %76 : vector<8xf32> to vector<8x1xf32>
    %78 = vector.broadcast %77 : vector<8x1xf32> to vector<8x8xf32>
    %79 = arith.subf %75, %78 : vector<8x8xf32>
    %80 = math.exp %79 : vector<8x8xf32>
    %cst_28 = arith.constant dense<0.000000e+00> : vector<8xf32>
    %81 = vector.multi_reduction <add>, %80, %cst_28 [1] : vector<8x8xf32> to vector<8xf32>
    %82 = vector.shape_cast %81 : vector<8xf32> to vector<8x1xf32>
    %83 = tpu.reciprocal %82 {approx = true} : vector<8x1xf32> -> vector<8x1xf32>
    %84 = vector.broadcast %83 : vector<8x1xf32> to vector<8x8xf32>
    %85 = arith.mulf %80, %84 : vector<8x8xf32>
    %86 = arith.addf %62, %85 : vector<8x8xf32>
    %87 = arith.truncf %85 : vector<8x8xf32> to vector<8x8xbf16>
    %cst_29 = arith.constant dense<0.000000e+00> : vector<8x32xf32>
    %88 = tpu.matmul %87, %74, %cst_29 {dimension_numbers = #tpu.dot_dimension_numbers<[1], [0], [0], [1], [0, 0, 1, 1], [], []>} : vector<8x8xbf16>, vector<8x32xbf16>, vector<8x32xf32> -> vector<8x32xf32>
    %89 = arith.truncf %88 : vector<8x32xf32> to vector<8x32xbf16>
    %90 = vector.extract_strided_slice %42 {offsets = [32, 0], sizes = [32, 128], strides = [1, 1]} : vector<128x128xbf16> to vector<32x128xbf16>
    %cst_30 = arith.constant dense<0.000000e+00> : vector<8x128xf32>
    %91 = tpu.matmul %89, %90, %cst_30 {dimension_numbers = #tpu.dot_dimension_numbers<[1], [0], [0], [1], [0, 0, 1, 1], [], []>} : vector<8x32xbf16>, vector<32x128xbf16>, vector<8x128xf32> -> vector<8x128xf32>
    %92 = arith.addf %68, %91 : vector<8x128xf32>
    %93 = vector.extract_strided_slice %39 {offsets = [0, 64], sizes = [8, 32], strides = [1, 1]} : vector<8x128xf32> to vector<8x32xf32>
    %94 = arith.truncf %93 : vector<8x32xf32> to vector<8x32xbf16>
    %95 = vector.extract_strided_slice %40 {offsets = [0, 64], sizes = [8, 32], strides = [1, 1]} : vector<8x128xf32> to vector<8x32xf32>
    %96 = arith.truncf %95 : vector<8x32xf32> to vector<8x32xbf16>
    %97 = vector.extract_strided_slice %41 {offsets = [0, 64], sizes = [8, 32], strides = [1, 1]} : vector<8x128xf32> to vector<8x32xf32>
    %98 = arith.truncf %97 : vector<8x32xf32> to vector<8x32xbf16>
    %cst_31 = arith.constant dense<0.000000e+00> : vector<8x8xf32>
    %99 = tpu.matmul %94, %96, %cst_31 {dimension_numbers = #tpu.dot_dimension_numbers<[1], [1], [0], [0], [0, 0, 1, 0], [], []>} : vector<8x32xbf16>, vector<8x32xbf16>, vector<8x8xf32> -> vector<8x8xf32>
    %cst_32 = arith.constant dense<0xFF800000> : vector<8xf32>
    %100 = vector.multi_reduction <maximumf>, %99, %cst_32 [1] : vector<8x8xf32> to vector<8xf32>
    %101 = vector.shape_cast %100 : vector<8xf32> to vector<8x1xf32>
    %102 = vector.broadcast %101 : vector<8x1xf32> to vector<8x8xf32>
    %103 = arith.subf %99, %102 : vector<8x8xf32>
    %104 = math.exp %103 : vector<8x8xf32>
    %cst_33 = arith.constant dense<0.000000e+00> : vector<8xf32>
    %105 = vector.multi_reduction <add>, %104, %cst_33 [1] : vector<8x8xf32> to vector<8xf32>
    %106 = vector.shape_cast %105 : vector<8xf32> to vector<8x1xf32>
    %107 = tpu.reciprocal %106 {approx = true} : vector<8x1xf32> -> vector<8x1xf32>
    %108 = vector.broadcast %107 : vector<8x1xf32> to vector<8x8xf32>
    %109 = arith.mulf %104, %108 : vector<8x8xf32>
    %110 = arith.addf %86, %109 : vector<8x8xf32>
    %111 = arith.truncf %109 : vector<8x8xf32> to vector<8x8xbf16>
    %cst_34 = arith.constant dense<0.000000e+00> : vector<8x32xf32>
    %112 = tpu.matmul %111, %98, %cst_34 {dimension_numbers = #tpu.dot_dimension_numbers<[1], [0], [0], [1], [0, 0, 1, 1], [], []>} : vector<8x8xbf16>, vector<8x32xbf16>, vector<8x32xf32> -> vector<8x32xf32>
    %113 = arith.truncf %112 : vector<8x32xf32> to vector<8x32xbf16>
    %114 = vector.extract_strided_slice %42 {offsets = [64, 0], sizes = [32, 128], strides = [1, 1]} : vector<128x128xbf16> to vector<32x128xbf16>
    %cst_35 = arith.constant dense<0.000000e+00> : vector<8x128xf32>
    %115 = tpu.matmul %113, %114, %cst_35 {dimension_numbers = #tpu.dot_dimension_numbers<[1], [0], [0], [1], [0, 0, 1, 1], [], []>} : vector<8x32xbf16>, vector<32x128xbf16>, vector<8x128xf32> -> vector<8x128xf32>
    %116 = arith.addf %92, %115 : vector<8x128xf32>
    %117 = vector.extract_strided_slice %39 {offsets = [0, 96], sizes = [8, 32], strides = [1, 1]} : vector<8x128xf32> to vector<8x32xf32>
    %118 = arith.truncf %117 : vector<8x32xf32> to vector<8x32xbf16>
    %119 = vector.extract_strided_slice %40 {offsets = [0, 96], sizes = [8, 32], strides = [1, 1]} : vector<8x128xf32> to vector<8x32xf32>
    %120 = arith.truncf %119 : vector<8x32xf32> to vector<8x32xbf16>
    %121 = vector.extract_strided_slice %41 {offsets = [0, 96], sizes = [8, 32], strides = [1, 1]} : vector<8x128xf32> to vector<8x32xf32>
    %122 = arith.truncf %121 : vector<8x32xf32> to vector<8x32xbf16>
    %cst_36 = arith.constant dense<0.000000e+00> : vector<8x8xf32>
    %123 = tpu.matmul %118, %120, %cst_36 {dimension_numbers = #tpu.dot_dimension_numbers<[1], [1], [0], [0], [0, 0, 1, 0], [], []>} : vector<8x32xbf16>, vector<8x32xbf16>, vector<8x8xf32> -> vector<8x8xf32>
    %cst_37 = arith.constant dense<0xFF800000> : vector<8xf32>
    %124 = vector.multi_reduction <maximumf>, %123, %cst_37 [1] : vector<8x8xf32> to vector<8xf32>
    %125 = vector.shape_cast %124 : vector<8xf32> to vector<8x1xf32>
    %126 = vector.broadcast %125 : vector<8x1xf32> to vector<8x8xf32>
    %127 = arith.subf %123, %126 : vector<8x8xf32>
    %128 = math.exp %127 : vector<8x8xf32>
    %cst_38 = arith.constant dense<0.000000e+00> : vector<8xf32>
    %129 = vector.multi_reduction <add>, %128, %cst_38 [1] : vector<8x8xf32> to vector<8xf32>
    %130 = vector.shape_cast %129 : vector<8xf32> to vector<8x1xf32>
    %131 = tpu.reciprocal %130 {approx = true} : vector<8x1xf32> -> vector<8x1xf32>
    %132 = vector.broadcast %131 : vector<8x1xf32> to vector<8x8xf32>
    %133 = arith.mulf %128, %132 : vector<8x8xf32>
    %134 = arith.addf %110, %133 : vector<8x8xf32>
    %135 = arith.truncf %133 : vector<8x8xf32> to vector<8x8xbf16>
    %cst_39 = arith.constant dense<0.000000e+00> : vector<8x32xf32>
    %136 = tpu.matmul %135, %122, %cst_39 {dimension_numbers = #tpu.dot_dimension_numbers<[1], [0], [0], [1], [0, 0, 1, 1], [], []>} : vector<8x8xbf16>, vector<8x32xbf16>, vector<8x32xf32> -> vector<8x32xf32>
    %137 = arith.truncf %136 : vector<8x32xf32> to vector<8x32xbf16>
    %138 = vector.extract_strided_slice %42 {offsets = [96, 0], sizes = [32, 128], strides = [1, 1]} : vector<128x128xbf16> to vector<32x128xbf16>
    %cst_40 = arith.constant dense<0.000000e+00> : vector<8x128xf32>
    %139 = tpu.matmul %137, %138, %cst_40 {dimension_numbers = #tpu.dot_dimension_numbers<[1], [0], [0], [1], [0, 0, 1, 1], [], []>} : vector<8x32xbf16>, vector<32x128xbf16>, vector<8x128xf32> -> vector<8x128xf32>
    %140 = arith.addf %116, %139 : vector<8x128xf32>
    %c0_41 = arith.constant 0 : index
    %c0_42 = arith.constant 0 : index
    %141 = vector.load %arg7[%c0_41, %c0_42] : memref<1x128xf32, #tpu.memory_space<vmem>>, vector<1x128xf32>
    %142 = vector.broadcast %141 : vector<1x128xf32> to vector<8x128xf32>
    %143 = arith.addf %140, %142 : vector<8x128xf32>
    %c0_43 = arith.constant 0 : index
    %c0_44 = arith.constant 0 : index
    %c0_45 = arith.constant 0 : index
    %144 = vector.load %arg12[%c0_43, %c0_44, %c0_45] : memref<1x8x128xf32, #tpu.memory_space<vmem>>, vector<1x8x128xf32>
    %145 = vector.shape_cast %144 : vector<1x8x128xf32> to vector<8x128xf32>
    %146 = vector.shape_cast %143 : vector<8x128xf32> to vector<1x8x128xf32>
    tpu.vector_store %arg12[%c0_43, %c0_44, %c0_45], %146 {strides = array<i32>} : memref<1x8x128xf32, #tpu.memory_space<vmem>>, vector<1x8x128xf32>,
    %147 = arith.truncf %143 : vector<8x128xf32> to vector<8x128xbf16>
    %c0_46 = arith.constant 0 : index
    %c0_47 = arith.constant 0 : index
    %148 = vector.load %arg8[%c0_46, %c0_47] : memref<128x32xbf16, #tpu.memory_space<vmem>>, vector<128x32xbf16>
    %cst_48 = arith.constant dense<0.000000e+00> : vector<8x32xf32>
    %149 = tpu.matmul %147, %148, %cst_48 {dimension_numbers = #tpu.dot_dimension_numbers<[1], [0], [0], [1], [0, 0, 1, 1], [], []>} : vector<8x128xbf16>, vector<128x32xbf16>, vector<8x32xf32> -> vector<8x32xf32>
    %c0_49 = arith.constant 0 : index
    %c0_50 = arith.constant 0 : index
    %150 = vector.load %arg9[%c0_49, %c0_50] : memref<1x32xf32, #tpu.memory_space<vmem>>, vector<1x32xf32>
    %151 = vector.broadcast %150 : vector<1x32xf32> to vector<8x32xf32>
    %152 = arith.addf %149, %151 : vector<8x32xf32>
    %cst_51 = arith.constant 0.000000e+00 : f32
    %153 = vector.broadcast %cst_51 : f32 to vector<8x32xf32>
    %154 = arith.maximumf %152, %153 : vector<8x32xf32>
    %c0_52 = arith.constant 0 : index
    %c0_53 = arith.constant 0 : index
    %155 = vector.load %arg10[%c0_52, %c0_53] : memref<1x32xf32, #tpu.memory_space<vmem>>, vector<1x32xf32>
    %156 = vector.broadcast %155 : vector<1x32xf32> to vector<8x32xf32>
    %157 = arith.mulf %154, %156 : vector<8x32xf32>
    %cst_54 = arith.constant dense<0.000000e+00> : vector<8xf32>
    %158 = vector.multi_reduction <add>, %157, %cst_54 [1] : vector<8x32xf32> to vector<8xf32>
    %159 = vector.shape_cast %158 : vector<8xf32> to vector<8x1xf32>
    %c0_55 = arith.constant 0 : index
    %c0_56 = arith.constant 0 : index
    %160 = vector.load %arg11[%c0_55, %c0_56] : memref<1x1xf32, #tpu.memory_space<vmem>>, vector<1x1xf32>
    %161 = vector.broadcast %160 : vector<1x1xf32> to vector<8x1xf32>
    %162 = arith.addf %159, %161 : vector<8x1xf32>
    %cst_57 = arith.constant 2.500000e-01 : f32
    %163 = vector.broadcast %cst_57 : f32 to vector<8x8xf32>
    %164 = arith.mulf %134, %163 : vector<8x8xf32>
    %cst_58 = arith.constant 0.000000e+00 : f32
    %165 = vector.broadcast %cst_58 : f32 to vector<8x119xf32>
    %166 = tpu.concatenate %162, %164, %165 in 1 : vector<8x1xf32>, vector<8x8xf32>, vector<8x119xf32> -> vector<8x128xf32>
    %c0_59 = arith.constant 0 : index
    %c0_60 = arith.constant 0 : index
    %c0_61 = arith.constant 0 : index
    %167 = vector.load %arg13[%c0_59, %c0_60, %c0_61] : memref<1x8x128xf32, #tpu.memory_space<vmem>>, vector<1x8x128xf32>
    %168 = vector.shape_cast %167 : vector<1x8x128xf32> to vector<8x128xf32>
    %169 = vector.shape_cast %166 : vector<8x128xf32> to vector<1x8x128xf32>
    tpu.vector_store %arg13[%c0_59, %c0_60, %c0_61], %169 {strides = array<i32>} : memref<1x8x128xf32, #tpu.memory_space<vmem>>, vector<1x8x128xf32>,
    return
  }
  func.func @transform_0(%arg0: i32) -> (i32, i32, i32) {
    %c0_i32 = arith.constant 0 : i32
    %c0_i32_0 = arith.constant 0 : i32
    %c0_i32_1 = arith.constant 0 : i32
    return %arg0, %c0_i32, %c0_i32_0 : i32, i32, i32
  }
  func.func @transform_1(%arg0: i32) -> (i32, i32, i32) {
    %c0_i32 = arith.constant 0 : i32
    %c0_i32_0 = arith.constant 0 : i32
    %c0_i32_1 = arith.constant 0 : i32
    return %arg0, %c0_i32, %c0_i32_0 : i32, i32, i32
  }
  func.func @transform_2(%arg0: i32) -> (i32, i32, i32) {
    %c0_i32 = arith.constant 0 : i32
    %c0_i32_0 = arith.constant 0 : i32
    %c0_i32_1 = arith.constant 0 : i32
    return %arg0, %c0_i32, %c0_i32_0 : i32, i32, i32
  }
  func.func @transform_3(%arg0: i32) -> (i32, i32) {
    %c0_i32 = arith.constant 0 : i32
    %c0_i32_0 = arith.constant 0 : i32
    %c0_i32_1 = arith.constant 0 : i32
    return %c0_i32, %c0_i32_0 : i32, i32
  }
  func.func @transform_4(%arg0: i32) -> (i32, i32) {
    %c0_i32 = arith.constant 0 : i32
    %c0_i32_0 = arith.constant 0 : i32
    %c0_i32_1 = arith.constant 0 : i32
    return %c0_i32, %c0_i32_0 : i32, i32
  }
  func.func @transform_5(%arg0: i32) -> (i32, i32) {
    %c0_i32 = arith.constant 0 : i32
    %c0_i32_0 = arith.constant 0 : i32
    %c0_i32_1 = arith.constant 0 : i32
    return %c0_i32, %c0_i32_0 : i32, i32
  }
  func.func @transform_6(%arg0: i32) -> (i32, i32) {
    %c0_i32 = arith.constant 0 : i32
    %c0_i32_0 = arith.constant 0 : i32
    %c0_i32_1 = arith.constant 0 : i32
    return %c0_i32, %c0_i32_0 : i32, i32
  }
  func.func @transform_7(%arg0: i32) -> (i32, i32) {
    %c0_i32 = arith.constant 0 : i32
    %c0_i32_0 = arith.constant 0 : i32
    %c0_i32_1 = arith.constant 0 : i32
    return %c0_i32, %c0_i32_0 : i32, i32
  }
  func.func @transform_8(%arg0: i32) -> (i32, i32) {
    %c0_i32 = arith.constant 0 : i32
    %c0_i32_0 = arith.constant 0 : i32
    %c0_i32_1 = arith.constant 0 : i32
    return %c0_i32, %c0_i32_0 : i32, i32
  }
  func.func @transform_9(%arg0: i32) -> (i32, i32) {
    %c0_i32 = arith.constant 0 : i32
    %c0_i32_0 = arith.constant 0 : i32
    %c0_i32_1 = arith.constant 0 : i32
    return %c0_i32, %c0_i32_0 : i32, i32
  }
  func.func @transform_10(%arg0: i32) -> (i32, i32) {
    %c0_i32 = arith.constant 0 : i32
    %c0_i32_0 = arith.constant 0 : i32
    %c0_i32_1 = arith.constant 0 : i32
    return %c0_i32, %c0_i32_0 : i32, i32
  }
  func.func @transform_11(%arg0: i32) -> (i32, i32, i32) {
    %c0_i32 = arith.constant 0 : i32
    %c0_i32_0 = arith.constant 0 : i32
    %c0_i32_1 = arith.constant 0 : i32
    return %arg0, %c0_i32, %c0_i32_0 : i32, i32, i32
  }
  func.func @transform_12(%arg0: i32) -> (i32, i32, i32) {
    %c0_i32 = arith.constant 0 : i32
    %c0_i32_0 = arith.constant 0 : i32
    %c0_i32_1 = arith.constant 0 : i32
    return %arg0, %c0_i32, %c0_i32_0 : i32, i32, i32
  }
}

</mosaic_0001>

<bundles_post_ra>
// kernel: tpu_custom_call.1
= control target key start
LH: loop header
LB: loop body
LE: loop exit
PB: predicated region body
PF: predicated region fallthrough
CT: control target
= control target key end

     0   :  { %s2186_s0 = inlined_call_operand.vmem [shape: f32[1,8,32], index: 0, kind: input, shape index: {}]   ;;  %s2187_s1 = inlined_call_operand.vmem [shape: f32[1,8,32], index: 1, kind: input, shape index: {}]   ;;  %s2188_s2 = inlined_call_operand.vmem [shape: f32[1,8,32], index: 2, kind: input, shape index: {}]   ;;  %s2189_s3 = inlined_call_operand.hbm [shape: bf16[128,384], index: 3, kind: input, shape index: {}]   ;;  %s2190_s4 = inlined_call_operand.vmem [shape: f32[1,384], index: 4, kind: input, shape index: {}]   ;;  %s2191_s5 = inlined_call_operand.vmem [shape: bf16[128,128], index: 5, kind: input, shape index: {}]   ;;  %s2192_s6 = inlined_call_operand.vmem [shape: f32[1,128], index: 6, kind: input, shape index: {}]   ;;  %s2193_s7 = inlined_call_operand.vmem [shape: bf16[128,32], index: 7, kind: input, shape index: {}]   ;;  %s2194_s8 = inlined_call_operand.vmem [shape: f32[1,32], index: 8, kind: input, shape index: {}]   ;;  %s2195_s9 = inlined_call_operand.vmem [shape: f32[1,32], index: 9, kind: input, shape index: {}]   ;;  %s2196_s10 = inlined_call_operand.<no memory space> [shape: f32[1,1], index: 10, kind: input, shape index: {}]   ;;  %s2197_s11 = inlined_call_operand.hbm [shape: f32[1,8,128], index: 11, kind: output, shape index: {0}]   ;;  %s2198_s12 = inlined_call_operand.hbm [shape: f32[1,8,128], index: 12, kind: output, shape index: {1}]  }
   0x1   :  { %v18_v0 = vstv %s2196_s10 }
   0x2   :  { %19 = vst [vmem:[#allocation2] sm:$0x1] %v18_v0 }
   0x3   :  { %20 = vsyncpa [#allocation4], 0 }
   0x4   :  { %21 = vsyncpa [#allocation5], 0 }
   0x5   :  { %22 = vsyncpa [#allocation8], 0  ;;  %s1861_s23 = smov [#allocation3]   ;;  %s1789_s27 = scalar_lea.hbm %s2189_s3, 3072 }
   0x6   :  { %s34_s24 = sshll.u32 %s1861_s23, 4  ;;  %p1790_p0 = scmp.ne.s32.totalorder %s2189_s3, %s1789_s27  ;;  %s35_s24 = int_to_ptr.vmem [resolvable:$true] %s34_s24 }
   0x7   :  { %p1793_p1 = scmp.lt.u32.totalorder %s1789_s27, %s2189_s3 }
   0x9   :  { %p1795_p2 = pnand %p1793_p1, %p1790_p0 }
   0xb   :  { %1798 = shalt.err (!%p1795_p2)
}
   0xc   :  { %s1799_s10 = scalar_lea.vmem %s35_s24, 3072  ;;  %p1804_p4 = scmp.lt.s32.totalorder %s35_s24, %s35_s24 }
   0xd   :  { %p1800_p3 = scmp.ne.s32.totalorder %s35_s24, %s1799_s10  ;;  %p1805_p5 = scmp.lt.s32.totalorder %s1799_s10, %s1799_s10 }
   0xf   :  { %p1806_p6 = por %p1805_p5, %p1804_p4 }
  0x11   :  { %p1807_p7 = pnand %p1806_p6, %p1800_p3 }
  0x13   :  { %1810 = shalt.err (!%p1807_p7)
}
  0x14   :  { %s1862_s14 = smov 192   ;;  %s1863_s15 = smov 12  }
  0x15   :  { %40 = dma.hbm_to_vmem [thread:$0]  %s2189_s3, 3072, %s35_s24, [#allocation4], %s1862_s14, %s1862_s14, %s1863_s15  }
  0x16   :  { %1855 = dma.done.wait [#allocation4], 3072  }
  0x17   :  { %1856 = vsyncadd [#allocation4], 4294964224  ;;  %v1864_v1 = vmov 0   ;;  %v1725_v2 = vld [vmem:[#allocation3 + $0x34] ss:$12 sps:$4 sm:$0xff]   ;;  %vm138_vm0 = vcmask 261120   ;;  %v581_v48 = vlaneseq }
  0x18   :  { %174 = vmatprep.mubr.bf16.mxu1 %v1864_v1  ;;  %407 = vmatprep.mubr.bf16.mxu0 %v1864_v1  ;;  %v1727_v3 = vld [vmem:[#allocation3 + $0x30] ss:$12 sps:$4 sm:$0xff]   ;;  %v1728_v4 = vld [vmem:[#allocation3 + $0x4c] ss:$12 sps:$4 sm:$0xff]   ;;  %v1730_v6 = vld [vmem:[#allocation3 + $0x48] ss:$12 sps:$4 sm:$0xff]  }
  0x19   :  { %142 = vmatprep.subr.bf16.mxu1 %v1725_v2  ;;  %v61_v5 = vld [vmem:[%s2188_s2] sm:$0xff]  ;;  %v1865_v14 = vmov 0.0   ;;  %vm1866_vm1 = vmmov 0   ;;  %v1750_v31 = vld [vmem:[#allocation3 + $0xac] ss:$12 sps:$4 sm:$0xff]   ;;  %v582_v57 = vshrl.u32 %v581_v48, 7 }
  0x1a   :  { %143 = vmatpush1.bf16.msra.mxu1 %v1727_v3  ;;  %v63_v7 = vmul.f32 %v61_v5, %v61_v5  ;;  %v1732_v8 = vld [vmem:[#allocation3 + $0x64] ss:$12 sps:$4 sm:$0xff]   ;;  %v1734_v9 = vld [vmem:[#allocation3 + $0x60] ss:$12 sps:$4 sm:$0xff]   ;;  %v1736_v12 = vld [vmem:[#allocation3 + $0x7c] ss:$12 sps:$4 sm:$0xff]  }
  0x1b   :  { %144 = vmatprep.subr.bf16.mxu1 %v1728_v4  ;;  %v1731_v11 = vld [vmem:[#allocation3 + $0x38] ss:$12 sps:$4 sm:$0xff]   ;;  %375 = vmatprep.subr.bf16.mxu0 %v1732_v8  ;;  %v1744_v19 = vld [vmem:[#allocation3 + $0x94] ss:$12 sps:$4 sm:$0xff]   ;;  %v1735_v20 = vld [vmem:[#allocation3 + $0x50] ss:$12 sps:$4 sm:$0xff]  }
  0x1c   :  { %v105_v10 = vpack.c.bf16 %v63_v7, %v63_v7  ;;  %376 = vmatpush1.bf16.msra.mxu0 %v1734_v9  ;;  %v1738_v13 = vld [vmem:[#allocation3 + $0x78] ss:$12 sps:$4 sm:$0xff]   ;;  %v1739_v24 = vld [vmem:[#allocation3] ss:$12 sps:$4 sm:$0xff]   ;;  %v1742_v26 = vld [vmem:[#allocation3 + $0x90] ss:$12 sps:$4 sm:$0xff]  }
  0x1d   :  { %377 = vmatprep.subr.bf16.mxu0 %v1736_v12  ;;  %v59_v15 = vld [vmem:[%s2186_s0] sm:$0xff]  ;;  %v1748_v35 = vld [vmem:[#allocation3 + $0xa8] ss:$12 sps:$4 sm:$0xff]   ;;  %v583_v58 = vsub.s32 0, %v582_v57  ;;  %v587_v62 = vsub.s32 1, %v582_v57  ;;  %vm682_vm2 = vcmask 1043456  }
  0x1e   :  { %145 = vmatpush1.bf16.msra.mxu1 %v1730_v6  ;;  %v60_v16 = vld [vmem:[%s2187_s1] sm:$0xff]  ;;  %v64_v17 = vsub.f32 %v59_v15, %v61_v5  ;;  %v69_v27 = vmul.f32 %v61_v5, %v59_v15  ;;  %v1751_v36 = vld [vmem:[#allocation3 + $0x8] ss:$12 sps:$4 sm:$0xff]   ;;  %vm665_vm3 = vcmask 64512   ;;  %s1868_s22 = smov 64   ;;  %s1869_s13 = smov 32  }
  0x1f   :  { %1581 = vmatprep.subr.bf16.mxu1 %v1865_v14  ;;  %v66_v18 = vsub.f32 %v60_v16, %v61_v5  ;;  %v1741_v21 = vld [vmem:[#allocation3 + $0x4] ss:$12 sps:$4 sm:$0xff]   ;;  %v70_v28 = vmul.f32 %v61_v5, %v60_v16  ;;  %v1747_v29 = vld [vmem:[#allocation3 + $0x1c] ss:$12 sps:$4 sm:$0xff]   ;;  %v62_v33 = vmul.f32 %v60_v16, %v59_v15  ;;  %v1752_v39 = vld [vmem:[#allocation3 + $0x20] ss:$12 sps:$4 sm:$0xff]  }
  0x20   :  { %378 = vmatpush1.bf16.msra.mxu0 %v1738_v13  ;;  %v65_v22 = vand.u32 2147483647, %v64_v17  ;;  %v1745_v32 = vld [vmem:[#allocation3 + $0x18] ss:$12 sps:$4 sm:$0xff]   ;;  %v1753_v40 = vld [vmem:[#allocation3 + $0x68] ss:$12 sps:$4 sm:$0xff]  }
  0x21   :  { %1474 = vmatmul.mubr.msk.bf16.vlgmr.msra.gmra.mrb[0].mxu1 %vm138_vm0, %v105_v10  ;;  %v67_v23 = vand.u32 2147483647, %v66_v18  ;;  %495 = vmatprep.subr.bf16.mxu0 %v1744_v19  ;;  %v71_v34 = vmul.f32 %v70_v28, %v69_v27  ;;  %v104_v37 = vpack.c.bf16 %v62_v33, %v62_v33  ;;  %v1754_v41 = vld [vmem:[#allocation3 + $0x80] ss:$12 sps:$4 sm:$0xff]   ;;  %v1755_v42 = vld [vmem:[#allocation3 + $0x98] ss:$12 sps:$4 sm:$0xff]  }
  0x22   :  { %1582 = vmatpush3.bf16.msra.mxu1 %v1731_v11  ;;  %1585 = vmatprep.mubr.msk.bf16.mxu1 %vm1866_vm1, %v1865_v14  ;;  %v1756_v43 = vld [vmem:[#allocation3 + $0xb0] ss:$12 sps:$4 sm:$0xff]   ;;  %s1870_s19 = smov 1  }
  0x23   :  { %1583 = vmatprep.subr.bf16.mxu1 %v1865_v14  ;;  %v68_v25 = vmul.f32 %v67_v23, %v65_v22  ;;  %v459_v38 = vpack.c.bf16 %v71_v34, %v71_v34  ;;  %v579_v61 = vld [vmem:[%s2190_s4] sm:$0x7]  ;;  %s1867_s4 = smov 96  }
  0x24   :  { %v584_v6 = vrot.slane %v579_v61, %v583_v58 }
  0x25   :  { %v339_v30 = vpack.c.bf16 %v68_v25, %v68_v25 }
  0x26   :  { %1584 = vmatpush3.bf16.msra.mxu1 %v1735_v20 }
  0x27   :  { %258 = vmatprep.subr.bf16.mxu1 %v1741_v21  ;;  %1490 = vmatmul.mubr.msk.bf16.vlgmr.msra.gmra.mrb[0].mxu0 %vm138_vm0, %v339_v30 }
  0x28   :  { %496 = vmatpush1.bf16.msra.mxu0 %v1742_v26  ;;  %527 = vmatprep.mubr.bf16.mxu0 %v1864_v1 }
  0x29   :  { %1586 = vmatmul.mubr.msk.bf16.vlgmr.msra.gmra.mrb[4].mxu1 %vm138_vm0, %v105_v10  ;;  %497 = vmatprep.subr.bf16.mxu0 %v1750_v31  ;;  %v588_v10 = vrot.slane %v579_v61, %v587_v62 }
  0x2a   :  { %259 = vmatpush1.bf16.msra.mxu1 %v1739_v24  ;;  %290 = vmatprep.mubr.bf16.mxu1 %v1864_v1 }
  0x2b   :  { %260 = vmatprep.subr.bf16.mxu1 %v1747_v29 }
  0x2c   :  { %498 = vmatpush1.bf16.msra.mxu0 %v1748_v35 }
  0x2d   :  { %1613 = vmatprep.subr.bf16.mxu0 %v1865_v14 }
  0x2e   :  { %261 = vmatpush1.bf16.msra.mxu1 %v1745_v32 }
  0x2f   :  { %1589 = vmatprep.subr.bf16.mxu1 %v1865_v14  ;;  %1498 = vmatmul.mubr.msk.bf16.vlgmr.msra.gmra.mrb[4].mxu0 %vm138_vm0, %v459_v38 }
  0x30   :  { %1615 = vmatprep.mubr.msk.bf16.mxu0 %vm1866_vm1, %v1865_v14 }
  0x31   :  { %1482 = vmatmul.mubr.msk.bf16.vlgmr.msra.gmra.mrb[8].mxu1 %vm138_vm0, %v104_v37 }
  0x32   :  { %1590 = vmatpush3.bf16.msra.mxu1 %v1751_v36  ;;  %1593 = vmatprep.mubr.msk.bf16.mxu1 %vm1866_vm1, %v1865_v14 }
  0x33   :  { %1591 = vmatprep.subr.bf16.mxu1 %v1865_v14 }
  0x36   :  { %1592 = vmatpush3.bf16.msra.mxu1 %v1752_v39 }
  0x37   :  { %1597 = vmatprep.subr.bf16.mxu1 %v1865_v14 }
  0x39   :  { %1594 = vmatmul.mubr.msk.bf16.vlgmr.msra.gmra.mrb[12].mxu1 %vm138_vm0, %v104_v37 }
  0x3a   :  { %1598 = vmatpush3.bf16.msra.mxu1 %v1753_v40  ;;  %1601 = vmatprep.mubr.msk.bf16.mxu1 %vm1866_vm1, %v1865_v14 }
  0x3b   :  { %1599 = vmatprep.subr.bf16.mxu1 %v1865_v14 }
  0x3e   :  { %1600 = vmatpush3.bf16.msra.mxu1 %v1754_v41 }
  0x3f   :  { %1605 = vmatprep.subr.bf16.mxu1 %v1865_v14 }
  0x41   :  { %1602 = vmatmul.mubr.msk.bf16.vlgmr.msra.gmra.mrb[16].mxu1 %vm138_vm0, %v339_v30  ;;  %v591_v30 = vsub.s32 2, %v582_v57 }
  0x42   :  { %1606 = vmatpush3.bf16.msra.mxu1 %v1755_v42  ;;  %1609 = vmatprep.mubr.msk.bf16.mxu1 %vm1866_vm1, %v1865_v14 }
  0x43   :  { %1607 = vmatprep.subr.bf16.mxu1 %v1865_v14  ;;  %v592_v31 = vrot.slane %v579_v61, %v591_v30 }
  0x46   :  { %1608 = vmatpush3.bf16.msra.mxu1 %v1756_v43 }
  0x47   :  { %1619 = vmatprep.subr.bf16.mxu1 %v1865_v14 }
  0x49   :  { %1610 = vmatmul.mubr.msk.bf16.vlgmr.msra.gmra.mrb[20].mxu1 %vm138_vm0, %v459_v38 }
  0x4a   :  { %1621 = vmatprep.mubr.msk.bf16.mxu1 %vm1866_vm1, %v1865_v14 }
  0xf4   :  { %v176_v44 = vpop.f32.mrb[0].mxu1 }
  0xf5   :  { %v178_v45 = vpop.f32.mrb[1].mxu1 }
  0xf6   :  { %v180_v46 = vpop.f32.mrb[2].mxu1 }
  0xf7   :  { %v181_v47 = vpop.f32.mrb[3].mxu1 }
  0xfa   :  { %v409_v50 = vpop.f32.mrb[0].mxu0 }
  0xfb   :  { %v411_v52 = vpop.f32.mrb[1].mxu0 }
  0xfc   :  { %v217_v49 = vpop.f32.mrb[4].mxu1  ;;  %v413_v54 = vpop.f32.mrb[2].mxu0 }
  0xfd   :  { %v1587_v51 = vpop.f32.mrb[5].mxu1  ;;  %v414_v56 = vpop.f32.mrb[3].mxu0 }
  0xfe   :  { %v220_v53 = vpop.f32.mrb[6].mxu1 }
  0xff   :  { %v1588_v55 = vpop.f32.mrb[7].mxu1 }
 0x102   :  { %v529_v60 = vpop.f32.mrb[4].mxu0 }
 0x103   :  { %v531_v1 = vpop.f32.mrb[5].mxu0 }
 0x104   :  { %v292_v59 = vpop.f32.mrb[8].mxu1  ;;  %v533_v4 = vpop.f32.mrb[6].mxu0 }
 0x105   :  { %v293_v63 = vadd.f32 %v292_v59, %v176_v44  ;;  %v294_v0 = vpop.f32.mrb[9].mxu1  ;;  %v534_v8 = vpop.f32.mrb[7].mxu0  ;;  %v1760_v4 = vld [vmem:[%s2191_s5 + $0x18] sm:$0xff]  }
 0x106   :  { %v295_v2 = vadd.f32 %v294_v0, %v178_v45  ;;  %v296_v3 = vpop.f32.mrb[10].mxu1 }
 0x107   :  { %v456_v5 = vadd.f32 %v409_v50, %v293_v63  ;;  %v297_v7 = vpop.f32.mrb[11].mxu1  ;;  %v1759_v3 = vld [vmem:[%s2191_s5 + $0x10] sm:$0xff]  }
 0x108   :  { %v457_v9 = vadd.f32 %v411_v52, %v295_v2 }
 0x109   :  { %v576_v11 = vadd.f32 %v529_v60, %v456_v5 }
 0x10a   :  { %v577_v12 = vadd.f32 %v531_v1, %v457_v9 }
 0x10b   :  { %v596_v13 = vadd.f32 %v584_v6, %v576_v11 }
 0x10c   :  { %v597_v15 = vadd.f32 %v588_v10, %v577_v12  ;;  %v333_v16 = vpop.f32.mrb[12].mxu1  ;;  %v1757_v10 = vld [vmem:[%s2191_s5] sm:$0xff]   ;;  %v1758_v12 = vld [vmem:[%s2191_s5 + $0x8] sm:$0xff]  }
 0x10d   :  { %v334_v17 = vadd.f32 %v333_v16, %v217_v49  ;;  %v1595_v18 = vpop.f32.mrb[13].mxu1  ;;  %v599_v19 = vmul.f32 0.17677669, %v596_v13 }
 0x10e   :  { %v1995_v20 = vpack.c.bf16 %v597_v15, %v597_v15  ;;  %v336_v21 = vpop.f32.mrb[14].mxu1 }
 0x10f   :  { %v1596_v22 = vpop.f32.mrb[15].mxu1  ;;  %v2001_v24 = vpack.c.bf16 %v599_v19, %v599_v19 }
 0x110   :  { %731 = vrot.lane.b32.xlu0 %v1995_v20, %s1867_s4  ;;  %v623_v23 = vsel %vm138_vm0, %v1995_v20, 0 }
 0x111   :  { %1614 = vmatpush3.bf16.xpose.msra.mxu0 %v623_v23 }
 0x112   :  { %1625 = vmatprep.subr.bf16.mxu0 %v1865_v14 }
 0x114   :  { %v450_v25 = vpop.f32.mrb[16].mxu1  ;;  %728 = vrot.lane.b32.xlu0 %v2001_v24, %s1867_s4 }
 0x115   :  { %v458_v26 = vadd.f32 %v450_v25, %v334_v17  ;;  %v1603_v27 = vpop.f32.mrb[17].mxu1 }
 0x116   :  { %v453_v28 = vpop.f32.mrb[18].mxu1 }
 0x117   :  { %v1604_v29 = vpop.f32.mrb[19].mxu1 }
 0x118   :  { %1616 = vmatmul.mubr.msk.bf16.vlgmr.msra.gmra.mrb[8].mxu0 %vm138_vm0, %v2001_v24 }
 0x119   :  { %1627 = vmatprep.mubr.msk.bf16.mxu0 %vm1866_vm1, %v1865_v14 }
 0x11c   :  { %v570_v32 = vpop.f32.mrb[20].mxu1 }
 0x11d   :  { %v578_v33 = vadd.f32 %v570_v32, %v458_v26  ;;  %v1611_v34 = vpop.f32.mrb[21].mxu1 }
 0x11e   :  { %v573_v35 = vpop.f32.mrb[22].mxu1 }
 0x11f   :  { %v598_v36 = vadd.f32 %v592_v31, %v578_v33  ;;  %v1612_v37 = vpop.f32.mrb[23].mxu1 }
 0x121   :  { %v2010_v38 = vpack.c.bf16 %v598_v36, %v598_v36 }
 0x123   :  { %v684_v39 = vsel %vm682_vm2, %v2010_v38, 0 }
 0x124   :  { %1620 = vmatpush3.bf16.msra.mxu1 %v684_v39 }
 0x125   :  { %1631 = vmatprep.subr.bf16.mxu1 %v1865_v14 }
 0x182   :  { %v732_v40 = vpop.permute.xlu0 %731 }
 0x183   :  { %v737_v41 = vsel %vm138_vm0, %v732_v40, 0 }
 0x184   :  { %1626 = vmatpush3.bf16.xpose.msra.mxu0 %v737_v41 }
 0x185   :  { %1637 = vmatprep.subr.bf16.mxu0 %v1865_v14 }
 0x186   :  { %v729_v42 = vpop.permute.xlu0 %728 }
 0x18b   :  { %1628 = vmatmul.mubr.msk.bf16.vlgmr.msra.gmra.mrb[12].mxu0 %vm138_vm0, %v729_v42 }
 0x18c   :  { %1641 = vmatprep.mubr.msk.bf16.mxu0 %vm1866_vm1, %v1865_v14  ;;  %1638 = vmatpush3.bf16.msra.mxu0 %v1759_v3 }
 0x18d   :  { %1639 = vmatprep.subr.bf16.mxu0 %v1865_v14 }
 0x190   :  { %1640 = vmatpush3.bf16.msra.mxu0 %v1760_v4 }
 0x191   :  { %1653 = vmatprep.subr.bf16.mxu0 %v1865_v14 }
 0x1eb   :  { %v659_v43 = vpop.f32.mrb[8].mxu0 }
 0x1ec   :  { %v1617_v44 = vpop.f32.mrb[9].mxu0  ;;  %v666_v45 = vsel %vm665_vm3, %v659_v43, -inf }
 0x1ed   :  { %667 = vmax.xlane.f32.xlu1 %v666_v45  ;;  %v662_v46 = vpop.f32.mrb[10].mxu0 }
 0x1ee   :  { %v1618_v47 = vpop.f32.mrb[11].mxu0 }
 0x25e   :  { %v773_v48 = vpop.f32.mrb[12].mxu0 }
 0x25f   :  { %v1629_v49 = vpop.f32.mrb[13].mxu0  ;;  %v779_v50 = vsel %vm665_vm3, %v773_v48, -inf }
 0x260   :  { %780 = vmax.xlane.f32.xlu1 %v779_v50  ;;  %v776_v51 = vpop.f32.mrb[14].mxu0 }
 0x261   :  { %v1630_v52 = vpop.f32.mrb[15].mxu0  ;;  %v1761_v51 = vld [vmem:[%s2191_s5 + $0x20] sm:$0xff]  }
 0x27a   :  { %v668_v53 = vpop.xlane.xlu1 %667 }
 0x27b   :  { %v669_v54 = vsub.f32 %v659_v43, %v668_v53 }
 0x27d   :  { %v670_v55 = vmul.f32 1.442695, %v669_v54 }
 0x27f   :  { %1773 = vpow2.f32 %v670_v55 }
 0x289   :  { %v1774_v56 = vpop.eup %1773 }
 0x28a   :  { %v672_v57 = vsel %vm665_vm3, %v1774_v56, 0.0 }
 0x28b   :  { %673 = vadd.xlane.f32.xlu0 %v672_v57 }
 0x2a1   :  { %1015 = vrot.lane.b32.xlu0 %v2010_v38, %s1868_s22 }
 0x2ed   :  { %v781_v58 = vpop.xlane.xlu1 %780 }
 0x2ee   :  { %v782_v59 = vsub.f32 %v773_v48, %v781_v58 }
 0x2f0   :  { %v783_v60 = vmul.f32 1.442695, %v782_v59  ;;  %v1762_v59 = vld [vmem:[%s2191_s5 + $0x28] sm:$0xff]  }
 0x2f2   :  { %1775 = vpow2.f32 %v783_v60 }
 0x2fc   :  { %v1776_v61 = vpop.eup %1775 }
 0x2fd   :  { %v785_v62 = vsel %vm665_vm3, %v1776_v61, 0.0 }
 0x2fe   :  { %786 = vadd.xlane.f32.xlu1 %v785_v62 }
 0x30f   :  { %793 = vrot.lane.b32.xlu1 %v2010_v38, %s1867_s4 }
 0x313   :  { %954 = vrot.lane.b32.xlu1 %v1995_v20, %s1868_s22 }
 0x317   :  { %952 = vrot.lane.b32.xlu1 %v2001_v24, %s1868_s22 }
 0x318   :  { %v674_v63 = vpop.xlane.xlu0 %673 }
 0x319   :  { %1777 = vrcp.f32 %v674_v63 }
 0x31c   :  { %v1016_v13 = vpop.permute.xlu0 %1015 }
 0x31d   :  { %v1021_v19 = vsel %vm682_vm2, %v1016_v13, 0 }
 0x323   :  { %v1778_v0 = vpop.eup %1777 }
 0x324   :  { %v2029_v1 = vmul.f32 %v1778_v0, %v1774_v56 }
 0x326   :  { %v678_v2 = vpack.c.bf16 %v2029_v1, %v2029_v1 }
 0x328   :  { %1622 = vmatmul.mubr.msk.bf16.vlgmr.msra.gmra.mrb[24].mxu1 %vm665_vm3, %v678_v2 }
 0x329   :  { %1633 = vmatprep.mubr.msk.bf16.mxu1 %vm1866_vm1, %v1865_v14 }
 0x38b   :  { %v787_v5 = vpop.xlane.xlu1 %786 }
 0x38c   :  { %1779 = vrcp.f32 %v787_v5 }
 0x38f   :  { %v794_v6 = vpop.permute.xlu1 %793 }
 0x390   :  { %v799_v7 = vsel %vm682_vm2, %v794_v6, 0 }
 0x391   :  { %1632 = vmatpush3.bf16.msra.mxu1 %v799_v7 }
 0x392   :  { %1645 = vmatprep.subr.bf16.mxu1 %v1865_v14 }
 0x393   :  { %v955_v22 = vpop.permute.xlu1 %954 }
 0x394   :  { %v960_v28 = vsel %vm138_vm0, %v955_v22, 0 }
 0x396   :  { %v1780_v8 = vpop.eup %1779 }
 0x397   :  { %v2046_v9 = vmul.f32 %v1780_v8, %v1776_v61  ;;  %v953_v30 = vpop.permute.xlu1 %952 }
 0x399   :  { %v791_v11 = vpack.c.bf16 %v2046_v9, %v2046_v9  ;;  %v790_v55 = vadd.f32 %v2046_v9, %v2029_v1 }
 0x39b   :  { %1634 = vmatmul.mubr.msk.bf16.vlgmr.msra.gmra.mrb[28].mxu1 %vm665_vm3, %v791_v11 }
 0x39c   :  { %1646 = vmatpush3.bf16.msra.mxu1 %v1757_v10  ;;  %1649 = vmatprep.mubr.msk.bf16.mxu1 %vm1866_vm1, %v1865_v14 }
 0x39d   :  { %1647 = vmatprep.subr.bf16.mxu1 %v1865_v14 }
 0x3a0   :  { %1648 = vmatpush3.bf16.msra.mxu1 %v1758_v12 }
 0x3a1   :  { %1659 = vmatprep.subr.bf16.mxu1 %v1865_v14 }
 0x3fb   :  { %v720_v15 = vpop.f32.mrb[24].mxu1 }
 0x3fc   :  { %v726_v16 = vpack.c.bf16 %v720_v15, %v720_v15  ;;  %v1623_v17 = vpop.f32.mrb[25].mxu1 }
 0x3fd   :  { %v723_v18 = vpop.f32.mrb[26].mxu1 }
 0x3fe   :  { %v1624_v21 = vpop.f32.mrb[27].mxu1  ;;  %1650 = vmatmul.mubr.msk.bf16.vlgmr.msra.gmra.mrb[32].mxu1 %vm138_vm0, %v726_v16 }
 0x3ff   :  { %1660 = vmatpush3.bf16.msra.mxu1 %v1021_v19  ;;  %1661 = vmatprep.mubr.msk.bf16.mxu1 %vm1866_vm1, %v1865_v14  ;;  %v1763_v19 = vld [vmem:[%s2191_s5 + $0x30] sm:$0xff]  }
 0x400   :  { %1673 = vmatprep.subr.bf16.mxu1 %v1865_v14 }
 0x46e   :  { %v835_v23 = vpop.f32.mrb[28].mxu1 }
 0x46f   :  { %v841_v25 = vpack.c.bf16 %v835_v23, %v835_v23  ;;  %v1635_v26 = vpop.f32.mrb[29].mxu1 }
 0x470   :  { %v838_v27 = vpop.f32.mrb[30].mxu1 }
 0x471   :  { %v1636_v29 = vpop.f32.mrb[31].mxu1  ;;  %1642 = vmatmul.mubr.msk.bf16.vlgmr.msra.gmra.mrb[16].mxu0 %vm138_vm0, %v841_v25  ;;  %v1764_v27 = vld [vmem:[%s2191_s5 + $0x38] sm:$0xff]  }
 0x472   :  { %1654 = vmatpush3.bf16.xpose.msra.mxu0 %v960_v28  ;;  %1655 = vmatprep.mubr.msk.bf16.mxu0 %vm1866_vm1, %v1865_v14  ;;  %v1765_v28 = vld [vmem:[%s2193_s7] sm:$0xff]   ;;  %v1766_v29 = vld [vmem:[%s2193_s7 + $0x8] sm:$0xff]  }
 0x473   :  { %1665 = vmatprep.subr.bf16.mxu0 %v1865_v14 }
 0x479   :  { %1656 = vmatmul.mubr.msk.bf16.vlgmr.msra.gmra.mrb[20].mxu0 %vm138_vm0, %v953_v30  ;;  %v1767_v30 = vld [vmem:[%s2193_s7 + $0x10] sm:$0xff]  }
 0x47a   :  { %1669 = vmatprep.mubr.msk.bf16.mxu0 %vm1866_vm1, %v1865_v14  ;;  %1666 = vmatpush3.bf16.msra.mxu0 %v1761_v51 }
 0x47b   :  { %1667 = vmatprep.subr.bf16.mxu0 %v1865_v14 }
 0x47e   :  { %1668 = vmatpush3.bf16.msra.mxu0 %v1762_v59 }
 0x47f   :  { %1679 = vmatprep.subr.bf16.mxu0 %v1865_v14 }
 0x4d1   :  { %v946_v31 = vpop.f32.mrb[32].mxu1 }
 0x4d2   :  { %v1651_v32 = vpop.f32.mrb[33].mxu1 }
 0x4d3   :  { %v949_v33 = vpop.f32.mrb[34].mxu1  ;;  %v1769_v32 = vld [vmem:[%s2193_s7 + $0x20] sm:$0xff]  }
 0x4d4   :  { %v1652_v34 = vpop.f32.mrb[35].mxu1  ;;  %v1770_v33 = vld [vmem:[%s2193_s7 + $0x28] sm:$0xff]  }
 0x544   :  { %v891_v35 = vpop.f32.mrb[16].mxu0 }
 0x545   :  { %v2074_v36 = vadd.f32 %v946_v31, %v891_v35  ;;  %v1643_v37 = vpop.f32.mrb[17].mxu0  ;;  %v1768_v31 = vld [vmem:[%s2193_s7 + $0x18] sm:$0xff]  }
 0x546   :  { %v894_v39 = vpop.f32.mrb[18].mxu0 }
 0x547   :  { %v1644_v40 = vpop.f32.mrb[19].mxu0 }
 0x548   :  { %v1771_v40 = vld [vmem:[%s2193_s7 + $0x30] sm:$0xff]  }
 0x54c   :  { %v996_v41 = vpop.f32.mrb[20].mxu0 }
 0x54d   :  { %v1657_v42 = vpop.f32.mrb[21].mxu0  ;;  %v1002_v43 = vsel %vm665_vm3, %v996_v41, -inf }
 0x54e   :  { %1003 = vmax.xlane.f32.xlu1 %v1002_v43  ;;  %v999_v44 = vpop.f32.mrb[22].mxu0  ;;  %v1520_v43 = vld [vmem:[%s2192_s6] ss:$0 sm:$0xff]  ;;  %s1871_s6 = smov [#allocation6]  }
 0x54f   :  { %v1658_v45 = vpop.f32.mrb[23].mxu0  ;;  %s1445_s18 = sshll.u32 %s1871_s6, 4  ;;  %s1446_s18 = int_to_ptr.vmem [resolvable:$true] %s1445_s18 }
 0x550   :  { %p1816_p9 = scmp.lt.s32.totalorder %s1446_s18, %s1446_s18 }
 0x5db   :  { %v1004_v46 = vpop.xlane.xlu1 %1003 }
 0x5dc   :  { %v1005_v47 = vsub.f32 %v996_v41, %v1004_v46  ;;  %v1772_v41 = vld [vmem:[%s2193_s7 + $0x38] sm:$0xff]  }
 0x5de   :  { %v1006_v48 = vmul.f32 1.442695, %v1005_v47 }
 0x5e0   :  { %1781 = vpow2.f32 %v1006_v48 }
 0x5ea   :  { %v1782_v49 = vpop.eup %1781 }
 0x5eb   :  { %v1008_v50 = vsel %vm665_vm3, %v1782_v49, 0.0 }
 0x5ec   :  { %1009 = vadd.xlane.f32.xlu0 %v1008_v50 }
 0x602   :  { %1122 = vrot.lane.b32.xlu0 %v1995_v20, %s1869_s13 }
 0x606   :  { %1120 = vrot.lane.b32.xlu0 %v2001_v24, %s1869_s13 }
 0x679   :  { %v1010_v52 = vpop.xlane.xlu0 %1009 }
 0x67a   :  { %1783 = vrcp.f32 %v1010_v52 }
 0x67d   :  { %v1123_v56 = vpop.permute.xlu0 %1122 }
 0x67e   :  { %v1128_v58 = vsel %vm138_vm0, %v1123_v56, 0 }
 0x681   :  { %v1121_v24 = vpop.permute.xlu0 %1120 }
 0x684   :  { %v1784_v53 = vpop.eup %1783 }
 0x685   :  { %v1012_v54 = vmul.f32 %v1784_v53, %v1782_v49 }
 0x687   :  { %v1014_v57 = vpack.c.bf16 %v1012_v54, %v1012_v54  ;;  %v1013_v20 = vadd.f32 %v1012_v54, %v790_v55  ;;  %v1530_v54 = vld [vmem:[%s2195_s9] ss:$0 sm:$0xff] }
 0x689   :  { %1662 = vmatmul.mubr.msk.bf16.vlgmr.msra.gmra.mrb[36].mxu1 %vm665_vm3, %v1014_v57 }
 0x68a   :  { %1674 = vmatpush3.bf16.xpose.msra.mxu1 %v1128_v58  ;;  %1675 = vmatprep.mubr.msk.bf16.mxu1 %vm1866_vm1, %v1865_v14 }
 0x68b   :  { %1685 = vmatprep.subr.bf16.mxu1 %v1865_v14 }
 0x691   :  { %1676 = vmatmul.mubr.msk.bf16.vlgmr.msra.gmra.mrb[40].mxu1 %vm138_vm0, %v1121_v24 }
 0x692   :  { %1689 = vmatprep.mubr.msk.bf16.mxu1 %vm1866_vm1, %v1865_v14  ;;  %1686 = vmatpush3.bf16.msra.mxu1 %v1763_v19 }
 0x693   :  { %1687 = vmatprep.subr.bf16.mxu1 %v1865_v14 }
 0x696   :  { %1688 = vmatpush3.bf16.msra.mxu1 %v1764_v27 }
 0x75c   :  { %v1057_v60 = vpop.f32.mrb[36].mxu1 }
 0x75d   :  { %v1063_v61 = vpack.c.bf16 %v1057_v60, %v1057_v60  ;;  %v1663_v62 = vpop.f32.mrb[37].mxu1 }
 0x75e   :  { %v1060_v63 = vpop.f32.mrb[38].mxu1 }
 0x75f   :  { %v1664_v0 = vpop.f32.mrb[39].mxu1  ;;  %1670 = vmatmul.mubr.msk.bf16.vlgmr.msra.gmra.mrb[24].mxu0 %vm138_vm0, %v1063_v61 }
 0x760   :  { %1681 = vmatprep.mubr.msk.bf16.mxu0 %vm1866_vm1, %v1865_v14 }
 0x764   :  { %v1164_v1 = vpop.f32.mrb[40].mxu1 }
 0x765   :  { %v1677_v2 = vpop.f32.mrb[41].mxu1  ;;  %v1170_v3 = vsel %vm665_vm3, %v1164_v1, -inf }
 0x766   :  { %1171 = vmax.xlane.f32.xlu0 %v1170_v3  ;;  %v1167_v4 = vpop.f32.mrb[42].mxu1 }
 0x767   :  { %v1678_v5 = vpop.f32.mrb[43].mxu1 }
 0x7f3   :  { %v1172_v6 = vpop.xlane.xlu0 %1171 }
 0x7f4   :  { %v1173_v7 = vsub.f32 %v1164_v1, %v1172_v6 }
 0x7f6   :  { %v1174_v8 = vmul.f32 1.442695, %v1173_v7 }
 0x7f8   :  { %1785 = vpow2.f32 %v1174_v8 }
 0x802   :  { %v1786_v9 = vpop.eup %1785 }
 0x803   :  { %v1176_v10 = vsel %vm665_vm3, %v1786_v9, 0.0 }
 0x804   :  { %1177 = vadd.xlane.f32.xlu1 %v1176_v10 }
 0x815   :  { %1183 = vrot.lane.b32.xlu1 %v2010_v38, %s1869_s13 }
 0x832   :  { %v1113_v11 = vpop.f32.mrb[24].mxu0 }
 0x833   :  { %v1119_v12 = vadd.f32 %v1113_v11, %v2074_v36  ;;  %v1671_v13 = vpop.f32.mrb[25].mxu0 }
 0x834   :  { %v1116_v15 = vpop.f32.mrb[26].mxu0 }
 0x835   :  { %v1672_v16 = vpop.f32.mrb[27].mxu0 }
 0x891   :  { %v1178_v17 = vpop.xlane.xlu1 %1177 }
 0x892   :  { %1787 = vrcp.f32 %v1178_v17 }
 0x895   :  { %v1184_v18 = vpop.permute.xlu1 %1183 }
 0x896   :  { %v1189_v21 = vsel %vm682_vm2, %v1184_v18, 0 }
 0x897   :  { %1680 = vmatpush3.bf16.msra.mxu0 %v1189_v21 }
 0x898   :  { %1693 = vmatprep.subr.bf16.mxu0 %v1865_v14 }
 0x89c   :  { %v1788_v38 = vpop.eup %1787 }
 0x89d   :  { %v1180_v22 = vmul.f32 %v1788_v38, %v1786_v9 }
 0x89f   :  { %v1182_v23 = vpack.c.bf16 %v1180_v22, %v1180_v22  ;;  %v1181_v25 = vadd.f32 %v1180_v22, %v1013_v20 }
 0x8a1   :  { %1682 = vmatmul.mubr.msk.bf16.vlgmr.msra.gmra.mrb[28].mxu0 %vm665_vm3, %v1182_v23  ;;  %v1429_v26 = vmul.f32 0.25, %v1181_v25 }
 0x8a2   :  { %1709 = vmatprep.mubr.msk.bf16.mxu0 %vm1866_vm1, %v1865_v14  ;;  %1694 = vmatpush3.bf16.msra.mxu0 %v1765_v28 }
 0x8a3   :  { %1431 = vrot.lane.b32.xlu0 %v1429_v26, %s1870_s19  ;;  %1695 = vmatprep.subr.bf16.mxu0 %v1865_v14  ;;  %s1811_s19 = scalar_lea.vmem %s1446_s18, 128 }
 0x8a4   :  { %p1812_p8 = scmp.ne.s32.totalorder %s1446_s18, %s1811_s19  ;;  %p1817_p10 = scmp.lt.s32.totalorder %s1811_s19, %s1811_s19 }
 0x8a6   :  { %1696 = vmatpush3.bf16.msra.mxu0 %v1766_v29  ;;  %p1818_p11 = por %p1817_p10, %p1816_p9 }
 0x8a7   :  { %1697 = vmatprep.subr.bf16.mxu0 %v1865_v14 }
 0x8a8   :  { %p1819_p12 = pnand %p1818_p11, %p1812_p8 }
 0x8aa   :  { %1698 = vmatpush3.bf16.msra.mxu0 %v1767_v30 }
 0x8ab   :  { %1699 = vmatprep.subr.bf16.mxu0 %v1865_v14 }
 0x8ae   :  { %1700 = vmatpush3.bf16.msra.mxu0 %v1768_v31 }
 0x8af   :  { %1701 = vmatprep.subr.bf16.mxu0 %v1865_v14 }
 0x8b2   :  { %1702 = vmatpush3.bf16.msra.mxu0 %v1769_v32 }
 0x8b3   :  { %1703 = vmatprep.subr.bf16.mxu0 %v1865_v14 }
 0x8b6   :  { %1704 = vmatpush3.bf16.msra.mxu0 %v1770_v33 }
 0x8b7   :  { %1705 = vmatprep.subr.bf16.mxu0 %v1865_v14 }
 0x8ba   :  { %1706 = vmatpush3.bf16.msra.mxu0 %v1771_v40 }
 0x8bb   :  { %1707 = vmatprep.subr.bf16.mxu0 %v1865_v14  ;;  %v1521_v14 = vld [vmem:[%s2194_s8] ss:$0 sm:$0xff] }
 0x8be   :  { %1708 = vmatpush3.bf16.msra.mxu0 %v1772_v41 }
 0x974   :  { %v1225_v34 = vpop.f32.mrb[28].mxu0 }
 0x975   :  { %v1231_v35 = vpack.c.bf16 %v1225_v34, %v1225_v34  ;;  %v1683_v36 = vpop.f32.mrb[29].mxu0 }
 0x976   :  { %v1228_v37 = vpop.f32.mrb[30].mxu0 }
 0x977   :  { %v1684_v39 = vpop.f32.mrb[31].mxu0  ;;  %1690 = vmatmul.mubr.msk.bf16.vlgmr.msra.gmra.mrb[44].mxu1 %vm138_vm0, %v1231_v35 }
 0xa4a   :  { %v1281_v42 = vpop.f32.mrb[44].mxu1 }
 0xa4b   :  { %v1287_v44 = vadd.f32 %v1281_v42, %v1119_v12  ;;  %v1691_v45 = vpop.f32.mrb[45].mxu1 }
 0xa4c   :  { %v1284_v46 = vpop.f32.mrb[46].mxu1 }
 0xa4d   :  { %v1295_v47 = vadd.f32 %v1520_v43, %v1287_v44  ;;  %v1692_v48 = vpop.f32.mrb[47].mxu1 }
 0xa4f   :  { %v1297_v49 = vpack.c.bf16 %v1295_v47, %v1295_v47  ;;  %1296 = vst [vmem:[#allocation6] sm:$0xff] %v1295_v47 }
 0xa51   :  { %1710 = vmatmul.mubr.bf16.vlgmr.msra.gmra.mrb[32].mxu0 %v1297_v49 }
 0xb24   :  { %v1403_v50 = vpop.f32.mrb[32].mxu0 }
 0xb25   :  { %v1404_v51 = vadd.f32 %v1521_v14, %v1403_v50  ;;  %v1711_v52 = vpop.f32.mrb[33].mxu0 }
 0xb26   :  { %v1406_v53 = vpop.f32.mrb[34].mxu0 }
 0xb27   :  { %v1409_v55 = vmax.f32 %v1404_v51, 0.0  ;;  %v1712_v56 = vpop.f32.mrb[35].mxu0 }
 0xb29   :  { %v1417_v57 = vmul.f32 %v1530_v54, %v1409_v55 }
 0xb2b   :  { %v1418_v20 = vsel %vm138_vm0, %v1417_v57, 0.0 }
 0xb2c   :  { %1419 = vadd.xlane.f32.xlu1 %v1418_v20 }
 0xb2d   :  { %1822 = shalt.err (!%p1819_p12)
}
 0xb2e   :  { %s1823_s9 = scalar_lea.hbm %s2197_s11, 128 }
 0xb2f   :  { %p1824_p13 = scmp.ne.s32.totalorder %s2197_s11, %s1823_s9  ;;  %p1827_p0 = scmp.lt.u32.totalorder %s1823_s9, %s2197_s11 }
 0xb31   :  { %p1829_p1 = pnand %p1827_p0, %p1824_p13 }
 0xb33   :  { %1832 = shalt.err (!%p1829_p1)
}
 0xb34   :  { %1448 = dma.vmem_to_hbm [thread:$0]  %s1446_s18, 128, %s2197_s11, [#allocation5]   ;;  %v1531_v58 = vld [vmem:[#allocation2] ss:$0 sm:$0xff]  ;;  %vm1434_vm4 = vcmask 7168   ;;  %vm1436_vm5 = vcmask 72704   ;;  %v1432_v60 = vpop.permute.xlu0 %1431 }
 0xb35   :  { %s1872_s22 = smov [#allocation7]  }
 0xb36   :  { %s1455_s5 = sshll.u32 %s1872_s22, 4  ;;  %s1456_s5 = int_to_ptr.vmem [resolvable:$true] %s1455_s5 }
 0xb37   :  { %s1833_s23 = scalar_lea.vmem %s1456_s5, 128  ;;  %p1838_p3 = scmp.lt.s32.totalorder %s1456_s5, %s1456_s5 }
 0xb38   :  { %p1834_p2 = scmp.ne.s32.totalorder %s1456_s5, %s1833_s23  ;;  %p1839_p4 = scmp.lt.s32.totalorder %s1833_s23, %s1833_s23 }
 0xb3a   :  { %p1840_p5 = por %p1839_p4, %p1838_p3 }
 0xb3c   :  { %p1841_p6 = pnand %p1840_p5, %p1834_p2 }
 0xbb9   :  { %v1420_v24 = vpop.xlane.xlu1 %1419 }
 0xbba   :  { %v1428_v59 = vadd.f32 %v1531_v58, %v1420_v24 }
 0xbbc   :  { %v1435_v61 = vsel %vm1434_vm4, %v1428_v59, %v1432_v60 }
 0xbbd   :  { %v1437_v62 = vsel %vm1436_vm5, %v1435_v61, 0.0 }
 0xbbe   :  { %1438 = vst [vmem:[#allocation7] sm:$0xff] %v1437_v62 }
 0xbbf   :  { %1844 = shalt.err (!%p1841_p6)
}
 0xbc0   :  { %s1845_s25 = scalar_lea.hbm %s2198_s12, 128 }
 0xbc1   :  { %p1846_p7 = scmp.ne.s32.totalorder %s2198_s12, %s1845_s25  ;;  %p1849_p8 = scmp.lt.u32.totalorder %s1845_s25, %s2198_s12 }
 0xbc3   :  { %p1851_p9 = pnand %p1849_p8, %p1846_p7 }
 0xbc5   :  { %1854 = shalt.err (!%p1851_p9)
}
 0xbc6   :  { %1458 = dma.vmem_to_hbm [thread:$0]  %s1456_s5, 128, %s2198_s12, [#allocation8]  }
 0xbc7   :  { %1857 = dma.done.wait [#allocation5], 128  }
 0xbc8   :  { %1858 = vsyncadd [#allocation5], 4294967168 }
 0xbc9   :  { %1859 = dma.done.wait [#allocation8], 128  }
 0xbca   :  { %1860 = vsyncadd [#allocation8], 4294967168 }
 0xbcb   :  { %1465 = vsyncpa [#allocation4], 1 }
 0xbcc   :  { %1466 = vsyncpa [#allocation5], 1 }
 0xbcd   :  { %1467 = vsyncpa [#allocation8], 1 }

</bundles_post_ra>
